<compile_context>
chip_gen: v6e
topology: v6e:2x2x1
jax: 0.10.0
libtpu: 0.0.40
codegen_flags: <defaults>
</compile_context>

<pallas_src>
import functools

import jax
import jax.numpy as jnp
from jax.experimental import pallas as pl
from jax.experimental.pallas import tpu as pltpu


def _leaky_relu(x, slope=0.3):
    return jnp.where(x >= 0, x, slope * x)


def _round_up(a, b):
    return ((a + b - 1) // b) * b


def deep_fc_kernel(x_ref, w1_ref, b1_ref, w2_ref, b2_ref, w3_ref, b3_ref, o_ref):
    """Fused: Linear -> Linear -> LeakyReLU(0.3) -> Linear -> LeakyReLU(0.3).

    Matmuls run in the weights' native dtype (full-rate bf16 MXU path when the
    caller provides bf16 params) with f32 accumulation; bias-add / activation
    are done in f32; result is cast to the output dtype on store.
    """
    w_dtype = w1_ref.dtype
    x = x_ref[...].astype(w_dtype)

    # Layer 1: Linear(D, H)   (no activation, matches the nn.Sequential)
    h1 = jnp.dot(x, w1_ref[...], preferred_element_type=jnp.float32)
    h1 = h1 + b1_ref[...].astype(jnp.float32)

    # Layer 2: Linear(H, H) + LeakyReLU(0.3)
    h2 = jnp.dot(h1.astype(w_dtype), w2_ref[...], preferred_element_type=jnp.float32)
    h2 = _leaky_relu(h2 + b2_ref[...].astype(jnp.float32))

    # Layer 3: Linear(H, O_pad) + LeakyReLU(0.3)
    h3 = jnp.dot(h2.astype(w_dtype), w3_ref[...], preferred_element_type=jnp.float32)
    h3 = _leaky_relu(h3 + b3_ref[...].astype(jnp.float32))

    o_ref[...] = h3.astype(o_ref.dtype)


@functools.partial(jax.jit, static_argnames=("block_m",))
def deep_fc(x, params, block_m=None):
    # TODO(synk): for hidden dims >= ~2-4K, stream W2/W3 in K-chunks
    # (pltpu.emit_pipeline + f32 accumulator) instead of keeping them resident.
    w1, b1, w2, b2, w3, b3 = params
    B, D = x.shape
    H = w1.shape[1]          # 2 * input_dim
    O = w3.shape[1]          # output_dim
    out_dtype = x.dtype

    # Lane-dense output: pad O to a multiple of 128. Zero weight/bias columns
    # produce exactly 0 through leaky-relu; sliced off below.
    O_pad = max(128, _round_up(O, 128))
    if O_pad != O:
        w3 = jnp.pad(w3, ((0, 0), (0, O_pad - O)))
        b3 = jnp.pad(b3, ((0, 0), (0, O_pad - O)))

    # Batch tiling: large sublane-dense tiles; zero-pad ragged batches.
    if block_m is None:
        block_m = min(512, _round_up(B, 8))
    block_m = _round_up(block_m, 8)
    B_pad = _round_up(B, block_m)
    if B_pad != B:
        x = jnp.pad(x, ((0, B_pad - B), (0, 0)))

    grid = (B_pad // block_m,)

    # Explicit VMEM budget: BlockSpec double-buffers every operand (including
    # the grid-invariant weights), plus f32 intermediates h1/h2.
    w_bytes = (D * H + H * H + H * O_pad) * w1.dtype.itemsize
    b_bytes = (2 * H + O_pad) * b1.dtype.itemsize
    io_bytes = block_m * (D * x.dtype.itemsize + O_pad * jnp.dtype(out_dtype).itemsize)
    act_bytes = 2 * block_m * H * 4
    needed = 2 * (w_bytes + b_bytes + io_bytes) + act_bytes
    vmem_limit = int(min(max(needed * 5 // 4, 32 * 1024 * 1024), 64 * 1024 * 1024))

    flops = 2 * B_pad * (D * H + H * H + H * O_pad)
    bytes_accessed = (w_bytes + b_bytes
                      + B_pad * D * x.dtype.itemsize
                      + B_pad * O_pad * jnp.dtype(out_dtype).itemsize)

    out_padded = pl.pallas_call(
        deep_fc_kernel,
        out_shape=jax.ShapeDtypeStruct((B_pad, O_pad), out_dtype),
        grid_spec=pltpu.PrefetchScalarGridSpec(
            num_scalar_prefetch=0,
            grid=grid,
            in_specs=[
                pl.BlockSpec((block_m, D), lambda i: (i, 0)),   # x tile
                pl.BlockSpec((D, H), lambda i: (0, 0)),          # w1 (resident)
                pl.BlockSpec((1, H), lambda i: (0, 0)),          # b1
                pl.BlockSpec((H, H), lambda i: (0, 0)),          # w2
                pl.BlockSpec((1, H), lambda i: (0, 0)),          # b2
                pl.BlockSpec((H, O_pad), lambda i: (0, 0)),      # w3 (lane-padded)
                pl.BlockSpec((1, O_pad), lambda i: (0, 0)),      # b3 (lane-padded)
            ],
            out_specs=pl.BlockSpec((block_m, O_pad), lambda i: (i, 0)),
        ),
        compiler_params=pltpu.CompilerParams(
            dimension_semantics=("parallel",),   # batch axis shards across TCs
            vmem_limit_bytes=vmem_limit,
        ),
        cost_estimate=pl.CostEstimate(
            flops=flops, transcendentals=0, bytes_accessed=bytes_accessed),
    )(x, w1, b1, w2, b2, w3, b3)

    return out_padded[:B, :O]


def init_deep_fc_params(key, input_dim, output_dim, dtype=jnp.float32):
    """Deterministic init matching nn.Linear default (uniform +/-1/sqrt(fan_in)).
    Weights stored as [in, out]."""
    hidden = input_dim * 2
    keys = jax.random.split(key, 6)

    def lin(kw, kb, fan_in, fan_out):
        bound = 1.0 / jnp.sqrt(fan_in)
        w = jax.random.uniform(kw, (fan_in, fan_out), dtype, -bound, bound)
        b = jax.random.uniform(kb, (1, fan_out), dtype, -bound, bound)
        return w, b

    w1, b1 = lin(keys[0], keys[1], input_dim, hidden)
    w2, b2 = lin(keys[2], keys[3], hidden, hidden)
    w3, b3 = lin(keys[4], keys[5], hidden, output_dim)
    return (w1, b1, w2, b2, w3, b3)


def deep_fc_ref(x, params):
    """Pure-JAX reference for correctness check."""
    w1, b1, w2, b2, w3, b3 = params
    h = x @ w1 + b1
    h = h @ w2 + b2
    h = jnp.where(h >= 0, h, 0.3 * h)
    h = h @ w3 + b3
    return jnp.where(h >= 0, h, 0.3 * h)


if __name__ == "__main__":
    key = jax.random.PRNGKey(0)
    k_x, k_p, k_x2 = jax.random.split(key, 3)

    batch, input_dim, output_dim = 8, 32, 16
    x = jax.random.normal(k_x, (batch, input_dim), jnp.float32)
    params = init_deep_fc_params(k_p, input_dim, output_dim)

    out = jax.block_until_ready(deep_fc(x, params))
    ref = deep_fc_ref(x, params)
    assert out.shape == (batch, output_dim)
    assert jnp.allclose(out, ref, atol=1e-5, rtol=1e-5), "mismatch vs reference"

    # Ragged batch + multi-step grid path (exercises padding + batch tiling).
    batch2 = 200
    x2 = jax.random.normal(k_x2, (batch2, input_dim), jnp.float32)
    out2 = jax.block_until_ready(deep_fc(x2, params, block_m=64))
    ref2 = deep_fc_ref(x2, params)
    assert out2.shape == (batch2, output_dim)
    assert jnp.allclose(out2, ref2, atol=1e-5, rtol=1e-5), "mismatch vs reference (ragged)"

    print("KERNEL_OK")
</pallas_src>

<mosaic_0001>
module attributes {stable_mosaic.version = 11 : i64} {
  func.func @deep_fc_kernel(%arg0: i32, %arg1: memref<8x32xf32, #tpu.memory_space<vmem>>, %arg2: memref<32x64xf32, #tpu.memory_space<vmem>>, %arg3: memref<1x64xf32, #tpu.memory_space<vmem>>, %arg4: memref<64x64xf32, #tpu.memory_space<vmem>>, %arg5: memref<1x64xf32, #tpu.memory_space<vmem>>, %arg6: memref<64x128xf32, #tpu.memory_space<vmem>>, %arg7: memref<1x128xf32, #tpu.memory_space<vmem>>, %arg8: memref<8x128xf32, #tpu.memory_space<vmem>>) attributes {dimension_semantics = [#tpu.dimension_semantics<parallel>], iteration_bounds = array<i64: 1>, scalar_prefetch = 0 : i64, scratch_operands = 0 : i64, tpu.core_type = #tpu.core_type<tc>, window_params = [{transform_indices = @transform_0, window_bounds = array<i64: 8, 32>}, {pipeline_mode = #tpu.pipeline_mode<synchronous>, transform_indices = @transform_1, window_bounds = array<i64: 32, 64>}, {pipeline_mode = #tpu.pipeline_mode<synchronous>, transform_indices = @transform_2, window_bounds = array<i64: 1, 64>}, {pipeline_mode = #tpu.pipeline_mode<synchronous>, transform_indices = @transform_3, window_bounds = array<i64: 64, 64>}, {pipeline_mode = #tpu.pipeline_mode<synchronous>, transform_indices = @transform_4, window_bounds = array<i64: 1, 64>}, {pipeline_mode = #tpu.pipeline_mode<synchronous>, transform_indices = @transform_5, window_bounds = array<i64: 64, 128>}, {pipeline_mode = #tpu.pipeline_mode<synchronous>, transform_indices = @transform_6, window_bounds = array<i64: 1, 128>}, {transform_indices = @transform_7, window_bounds = array<i64: 8, 128>}]} {
    %c0 = arith.constant 0 : index
    %c0_0 = arith.constant 0 : index
    %0 = vector.load %arg1[%c0, %c0_0] : memref<8x32xf32, #tpu.memory_space<vmem>>, vector<8x32xf32>
    %c0_1 = arith.constant 0 : index
    %c0_2 = arith.constant 0 : index
    %1 = vector.load %arg2[%c0_1, %c0_2] : memref<32x64xf32, #tpu.memory_space<vmem>>, vector<32x64xf32>
    %cst = arith.constant dense<0.000000e+00> : vector<8x64xf32>
    %2 = tpu.matmul %0, %1, %cst {dimension_numbers = #tpu.dot_dimension_numbers<[1], [0], [0], [1], [0, 0, 1, 1], [], []>} : vector<8x32xf32>, vector<32x64xf32>, vector<8x64xf32> -> vector<8x64xf32>
    %c0_3 = arith.constant 0 : index
    %c0_4 = arith.constant 0 : index
    %3 = vector.load %arg3[%c0_3, %c0_4] : memref<1x64xf32, #tpu.memory_space<vmem>>, vector<1x64xf32>
    %4 = vector.broadcast %3 : vector<1x64xf32> to vector<8x64xf32>
    %5 = arith.addf %2, %4 : vector<8x64xf32>
    %c0_5 = arith.constant 0 : index
    %c0_6 = arith.constant 0 : index
    %6 = vector.load %arg4[%c0_5, %c0_6] : memref<64x64xf32, #tpu.memory_space<vmem>>, vector<64x64xf32>
    %cst_7 = arith.constant dense<0.000000e+00> : vector<8x64xf32>
    %7 = tpu.matmul %5, %6, %cst_7 {dimension_numbers = #tpu.dot_dimension_numbers<[1], [0], [0], [1], [0, 0, 1, 1], [], []>} : vector<8x64xf32>, vector<64x64xf32>, vector<8x64xf32> -> vector<8x64xf32>
    %c0_8 = arith.constant 0 : index
    %c0_9 = arith.constant 0 : index
    %8 = vector.load %arg5[%c0_8, %c0_9] : memref<1x64xf32, #tpu.memory_space<vmem>>, vector<1x64xf32>
    %9 = vector.broadcast %8 : vector<1x64xf32> to vector<8x64xf32>
    %10 = arith.addf %7, %9 : vector<8x64xf32>
    %cst_10 = arith.constant 0.000000e+00 : f32
    %11 = vector.broadcast %cst_10 : f32 to vector<8x64xf32>
    %12 = arith.cmpf oge, %10, %11 : vector<8x64xf32>
    %cst_11 = arith.constant 3.000000e-01 : f32
    %13 = vector.broadcast %cst_11 : f32 to vector<8x64xf32>
    %14 = arith.mulf %13, %10 : vector<8x64xf32>
    %15 = arith.select %12, %10, %14 : vector<8x64xi1>, vector<8x64xf32>
    %c0_12 = arith.constant 0 : index
    %c0_13 = arith.constant 0 : index
    %16 = vector.load %arg6[%c0_12, %c0_13] : memref<64x128xf32, #tpu.memory_space<vmem>>, vector<64x128xf32>
    %cst_14 = arith.constant dense<0.000000e+00> : vector<8x128xf32>
    %17 = tpu.matmul %15, %16, %cst_14 {dimension_numbers = #tpu.dot_dimension_numbers<[1], [0], [0], [1], [0, 0, 1, 1], [], []>} : vector<8x64xf32>, vector<64x128xf32>, vector<8x128xf32> -> vector<8x128xf32>
    %c0_15 = arith.constant 0 : index
    %c0_16 = arith.constant 0 : index
    %18 = vector.load %arg7[%c0_15, %c0_16] : memref<1x128xf32, #tpu.memory_space<vmem>>, vector<1x128xf32>
    %19 = vector.broadcast %18 : vector<1x128xf32> to vector<8x128xf32>
    %20 = arith.addf %17, %19 : vector<8x128xf32>
    %cst_17 = arith.constant 0.000000e+00 : f32
    %21 = vector.broadcast %cst_17 : f32 to vector<8x128xf32>
    %22 = arith.cmpf oge, %20, %21 : vector<8x128xf32>
    %cst_18 = arith.constant 3.000000e-01 : f32
    %23 = vector.broadcast %cst_18 : f32 to vector<8x128xf32>
    %24 = arith.mulf %23, %20 : vector<8x128xf32>
    %25 = arith.select %22, %20, %24 : vector<8x128xi1>, vector<8x128xf32>
    %c0_19 = arith.constant 0 : index
    %c0_20 = arith.constant 0 : index
    %26 = vector.load %arg8[%c0_19, %c0_20] : memref<8x128xf32, #tpu.memory_space<vmem>>, vector<8x128xf32>
    tpu.vector_store %arg8[%c0_19, %c0_20], %25 {strides = array<i32>} : memref<8x128xf32, #tpu.memory_space<vmem>>, vector<8x128xf32>,
    return
  }
  func.func @transform_0(%arg0: i32) -> (i32, i32) {
    %c0_i32 = arith.constant 0 : i32
    %c0_i32_0 = arith.constant 0 : i32
    return %arg0, %c0_i32 : i32, i32
  }
  func.func @transform_1(%arg0: i32) -> (i32, i32) {
    %c0_i32 = arith.constant 0 : i32
    %c0_i32_0 = arith.constant 0 : i32
    %c0_i32_1 = arith.constant 0 : i32
    return %c0_i32, %c0_i32_0 : i32, i32
  }
  func.func @transform_2(%arg0: i32) -> (i32, i32) {
    %c0_i32 = arith.constant 0 : i32
    %c0_i32_0 = arith.constant 0 : i32
    %c0_i32_1 = arith.constant 0 : i32
    return %c0_i32, %c0_i32_0 : i32, i32
  }
  func.func @transform_3(%arg0: i32) -> (i32, i32) {
    %c0_i32 = arith.constant 0 : i32
    %c0_i32_0 = arith.constant 0 : i32
    %c0_i32_1 = arith.constant 0 : i32
    return %c0_i32, %c0_i32_0 : i32, i32
  }
  func.func @transform_4(%arg0: i32) -> (i32, i32) {
    %c0_i32 = arith.constant 0 : i32
    %c0_i32_0 = arith.constant 0 : i32
    %c0_i32_1 = arith.constant 0 : i32
    return %c0_i32, %c0_i32_0 : i32, i32
  }
  func.func @transform_5(%arg0: i32) -> (i32, i32) {
    %c0_i32 = arith.constant 0 : i32
    %c0_i32_0 = arith.constant 0 : i32
    %c0_i32_1 = arith.constant 0 : i32
    return %c0_i32, %c0_i32_0 : i32, i32
  }
  func.func @transform_6(%arg0: i32) -> (i32, i32) {
    %c0_i32 = arith.constant 0 : i32
    %c0_i32_0 = arith.constant 0 : i32
    %c0_i32_1 = arith.constant 0 : i32
    return %c0_i32, %c0_i32_0 : i32, i32
  }
  func.func @transform_7(%arg0: i32) -> (i32, i32) {
    %c0_i32 = arith.constant 0 : i32
    %c0_i32_0 = arith.constant 0 : i32
    return %arg0, %c0_i32 : i32, i32
  }
}

</mosaic_0001>

<bundles_post_ra>
// kernel: deep_fc.1
= control target key start
LH: loop header
LB: loop body
LE: loop exit
PB: predicated region body
PF: predicated region fallthrough
CT: control target
= control target key end

     0   :  { %v414_v1 = vmov 0.0   ;;  %vm415_vm0 = vmmov 0   ;;  %s560_s0 = inlined_call_operand.vmem [shape: f32[8,32], index: 0, kind: input, shape index: {}]   ;;  %s561_s1 = inlined_call_operand.vmem [shape: f32[32,64], index: 1, kind: input, shape index: {}]   ;;  %s562_s2 = inlined_call_operand.vmem [shape: f32[1,64], index: 2, kind: input, shape index: {}]   ;;  %s563_s3 = inlined_call_operand.vmem [shape: f32[64,64], index: 3, kind: input, shape index: {}]   ;;  %s564_s4 = inlined_call_operand.vmem [shape: f32[1,64], index: 4, kind: input, shape index: {}]   ;;  %s565_s5 = inlined_call_operand.vmem [shape: f32[64,128], index: 5, kind: input, shape index: {}]   ;;  %s566_s6 = inlined_call_operand.vmem [shape: f32[1,128], index: 6, kind: input, shape index: {}]   ;;  %s567_s7 = inlined_call_operand.hbm [shape: f32[8,128], index: 7, kind: output, shape index: {}]  }
   0x1   :  { %v31_v0 = vld [vmem:[%s561_s1 + $0x18] sm:$0xff]  ;;  %340 = vmatprep.subr.mxu0 %v414_v1  ;;  %v30_v2 = vld [vmem:[%s561_s1 + $0x10] sm:$0xff]  ;;  %348 = vmatprep.mubr.msk.f32.mxu0 %vm415_vm0, %v414_v1  ;;  %v29_v5 = vld [vmem:[%s561_s1 + $0x8] sm:$0xff] }
   0x2   :  { %v120_v3 = vld [vmem:[%s563_s3 + $0x38] sm:$0xff]  ;;  %341 = vmatpush3.msra.mxu0 %v31_v0  ;;  %351 = vmatprep.subr.mxu1 %v414_v1  ;;  %v119_v4 = vld [vmem:[%s563_s3 + $0x30] sm:$0xff]  ;;  %v118_v6 = vld [vmem:[%s563_s3 + $0x28] sm:$0xff] }
   0x3   :  { %342 = vmatprep.subr.mxu0 %v414_v1  ;;  %352 = vmatpush3.msra.mxu1 %v120_v3 }
   0x4   :  { %343 = vmatpush3.msra.mxu0 %v30_v2  ;;  %353 = vmatprep.subr.mxu1 %v414_v1 }
   0x5   :  { %12 = vsyncpa [#allocation3], 0  ;;  %344 = vmatprep.subr.mxu0 %v414_v1  ;;  %v28_v7 = vld [vmem:[%s561_s1] sm:$0xff]  ;;  %354 = vmatpush3.msra.mxu1 %v119_v4  ;;  %vm39_vm1 = vcmask 261120   ;;  %v116_v10 = vld [vmem:[%s563_s3 + $0x18] sm:$0xff]  ;;  %vm128_vm2 = vcmask 523264  }
   0x6   :  { %345 = vmatpush3.msra.mxu0 %v29_v5  ;;  %v27_v8 = vld [vmem:[%s560_s0] sm:$0xff]  ;;  %355 = vmatprep.subr.mxu1 %v414_v1  ;;  %v115_v11 = vld [vmem:[%s563_s3 + $0x10] sm:$0xff]  ;;  %v114_v12 = vld [vmem:[%s563_s3 + $0x8] sm:$0xff] }
   0x7   :  { %v117_v9 = vld [vmem:[%s563_s3 + $0x20] sm:$0xff]  ;;  %346 = vmatprep.subr.mxu0 %v414_v1  ;;  %356 = vmatpush3.msra.mxu1 %v118_v6  ;;  %v212_v14 = vld [vmem:[%s565_s5 + $0x38] sm:$0xff]  ;;  %v211_v15 = vld [vmem:[%s565_s5 + $0x30] sm:$0xff] }
   0x8   :  { %347 = vmatpush3.msra.mxu0 %v28_v7  ;;  %357 = vmatprep.subr.mxu1 %v414_v1  ;;  %v113_v13 = vld [vmem:[%s563_s3] sm:$0xff]  ;;  %v210_v16 = vld [vmem:[%s565_s5 + $0x28] sm:$0xff]  ;;  %v208_v18 = vld [vmem:[%s565_s5 + $0x18] sm:$0xff] }
   0x9   :  { %349 = vmatmul.mubr.msk.f32.vlgmr.msra.gmra.mxu0 %vm39_vm1, %v27_v8  ;;  %358 = vmatpush3.msra.mxu1 %v117_v9  ;;  %v209_v17 = vld [vmem:[%s565_s5 + $0x20] sm:$0xff]  ;;  %v207_v23 = vld [vmem:[%s565_s5 + $0x10] sm:$0xff]  ;;  %v206_v24 = vld [vmem:[%s565_s5 + $0x8] sm:$0xff] }
   0xa   :  { %359 = vmatprep.subr.mxu1 %v414_v1  ;;  %367 = vmatprep.mubr.msk.f32.mxu1 %vm415_vm0, %v414_v1  ;;  %v311_v19 = vld [vmem:[%s562_s2] ss:$0 sm:$0xff] }
   0xb   :  { %360 = vmatpush3.msra.mxu1 %v116_v10  ;;  %370 = vmatprep.subr.mxu0 %v414_v1  ;;  %v205_v25 = vld [vmem:[%s565_s5] sm:$0xff]  ;;  %s416_s5 = smov [#allocation2]  }
   0xc   :  { %361 = vmatprep.subr.mxu1 %v414_v1  ;;  %386 = vmatprep.mubr.msk.f32.mxu0 %vm415_vm0, %v414_v1  ;;  %v313_v26 = vld [vmem:[%s564_s4] ss:$0 sm:$0xff]  ;;  %s303_s20 = sshll.u32 %s416_s5, 4  ;;  %s304_s20 = int_to_ptr.vmem [resolvable:$true] %s303_s20 }
   0xd   :  { %362 = vmatpush3.msra.mxu1 %v115_v11  ;;  %371 = vmatpush3.msra.mxu0 %v212_v14  ;;  %v315_v32 = vld [vmem:[%s566_s6] ss:$0 sm:$0xff]  ;;  %s392_s4 = scalar_lea.vmem %s304_s20, 128  ;;  %p397_p1 = scmp.lt.s32.totalorder %s304_s20, %s304_s20 }
   0xe   :  { %363 = vmatprep.subr.mxu1 %v414_v1  ;;  %372 = vmatprep.subr.mxu0 %v414_v1  ;;  %p393_p0 = scmp.ne.s32.totalorder %s304_s20, %s392_s4  ;;  %p398_p2 = scmp.lt.s32.totalorder %s392_s4, %s392_s4 }
   0xf   :  { %364 = vmatpush3.msra.mxu1 %v114_v12  ;;  %373 = vmatpush3.msra.mxu0 %v211_v15 }
  0x10   :  { %365 = vmatprep.subr.mxu1 %v414_v1  ;;  %374 = vmatprep.subr.mxu0 %v414_v1  ;;  %p399_p3 = por %p398_p2, %p397_p1 }
  0x11   :  { %366 = vmatpush3.msra.mxu1 %v113_v13  ;;  %375 = vmatpush3.msra.mxu0 %v210_v16 }
  0x12   :  { %376 = vmatprep.subr.mxu0 %v414_v1  ;;  %p400_p4 = pnand %p399_p3, %p393_p0 }
  0x13   :  { %377 = vmatpush3.msra.mxu0 %v209_v17 }
  0x14   :  { %378 = vmatprep.subr.mxu0 %v414_v1 }
  0x15   :  { %379 = vmatpush3.msra.mxu0 %v208_v18 }
  0x16   :  { %380 = vmatprep.subr.mxu0 %v414_v1 }
  0x17   :  { %381 = vmatpush3.msra.mxu0 %v207_v23 }
  0x18   :  { %382 = vmatprep.subr.mxu0 %v414_v1 }
  0x19   :  { %383 = vmatpush3.msra.mxu0 %v206_v24 }
  0x1a   :  { %384 = vmatprep.subr.mxu0 %v414_v1 }
  0x1b   :  { %385 = vmatpush3.msra.mxu0 %v205_v25 }
  0xc9   :  { %v109_v20 = vpop.f32.mrf.mxu0 }
  0xca   :  { %v110_v21 = vadd.f32 %v311_v19, %v109_v20 }
  0xcb   :  { %v350_v22 = vpop.f32.mrf.mxu0 }
  0xcc   :  { %368 = vmatmul.mubr.msk.f32.vlgmr.msra.gmra.mxu1 %vm128_vm2, %v110_v21 }
 0x18c   :  { %v198_v27 = vpop.f32.mrf.mxu1 }
 0x18d   :  { %v199_v28 = vadd.f32 %v313_v26, %v198_v27 }
 0x18e   :  { %v369_v29 = vpop.f32.mrf.mxu1 }
 0x18f   :  { %vm202_vm3 = vcmp.ge.f32.partialorder %v199_v28, 0.0  ;;  %v203_v30 = vmul.f32 0.3, %v199_v28 }
 0x191   :  { %v204_v31 = vsel %vm202_vm3, %v199_v28, %v203_v30 }
 0x192   :  { %387 = vmatmul.mubr.msk.f32.vlgmr.msra.gmra.mxu0 %vm128_vm2, %v204_v31 }
 0x252   :  { %v289_v33 = vpop.f32.mrf.mxu0 }
 0x253   :  { %v290_v34 = vadd.f32 %v315_v32, %v289_v33 }
 0x254   :  { %v388_v35 = vpop.f32.mrf.mxu0 }
 0x255   :  { %v294_v36 = vmul.f32 0.3, %v290_v34  ;;  %vm293_vm4 = vcmp.ge.f32.partialorder %v290_v34, 0.0 }
 0x257   :  { %v295_v37 = vsel %vm293_vm4, %v290_v34, %v294_v36 }
 0x258   :  { %296 = vst [vmem:[#allocation2] sm:$0xff] %v295_v37 }
 0x259   :  { %403 = shalt.err (!%p400_p4)
}
 0x25a   :  { %306 = dma.vmem_to_hbm [thread:$0]  %s304_s20, 128, %s567_s7, [#allocation3]  }
 0x25b   :  { %412 = dma.done.wait [#allocation3], 128  }
 0x25c   :  { %413 = vsyncadd [#allocation3], 4294967168 }
 0x25d   :  { %310 = vsyncpa [#allocation3], 1 }

</bundles_post_ra>
